<compile_context>
chip_gen: v6e
topology: v6e:2x2x1
jax: 0.10.0
libtpu: 0.0.40
codegen_flags: <defaults>
</compile_context>

<pallas_src>
import numpy as np
import jax
import jax.numpy as jnp
from jax.experimental import pallas as pl
from jax.experimental.pallas import tpu as pltpu


# ----------------------------- configuration --------------------------------
OUT_DIM = 128           # out_dim (lane axis; multiple of 128)
NCROPS = 6              # total number of student crops (>= 2)
BATCH = 8               # samples per crop
STUDENT_TEMP = 0.1
CENTER_MOMENTUM = 0.9
WARMUP_TEACHER_TEMP = 0.04
TEACHER_TEMP = 0.07
WARMUP_TEACHER_TEMP_EPOCHS = 5
NEPOCHS = 10

INV_STUDENT_TEMP = 1.0 / STUDENT_TEMP        # compile-time constant in kernel
N_LOSS_TERMS = 2 * (NCROPS - 1)
MAX_TILE_ROWS = 64      # per-tile batch-row cap (sized for v7x's 64 MiB VMEM)

# teacher temperature schedule (host-side buffer, like the PyTorch module)
TEACHER_TEMP_SCHEDULE = np.concatenate(
    (np.linspace(WARMUP_TEACHER_TEMP, TEACHER_TEMP, WARMUP_TEACHER_TEMP_EPOCHS),
     np.ones(NEPOCHS - WARMUP_TEACHER_TEMP_EPOCHS) * TEACHER_TEMP))


def _pick_row_tile(batch):
    """Largest row tile <= MAX_TILE_ROWS that tiles the batch evenly."""
    if batch <= MAX_TILE_ROWS:
        return batch
    for tb in range(MAX_TILE_ROWS, 7, -8):
        if tb % 8 == 0 and batch % tb == 0:
            return tb
    return batch    # fall back to whole-batch rows


# ------------------------------- kernel --------------------------------------
def dino_loss_kernel(inv_tt_ref, teacher_ref, student_ref, center_ref,
                     ce_ref, tsum_ref, q_ref):
    """One grid step = (batch-row tile r, student crop v).

    inv_tt_ref  : SMEM (1,)        1 / teacher_temp
    teacher_ref : VMEM (2, TB, D)  raw teacher logits for this row tile
    student_ref : VMEM (1, TB, D)  raw student logits, crop v, this row tile
    center_ref  : VMEM (1, D)
    ce_ref      : VMEM (TB, 1)     per-batch-row CE accumulator (over v, iq)
    tsum_ref    : VMEM (1, D)      raw teacher column sums for this row tile
    q_ref       : VMEM (2, TB, D)  f32 teacher softmax scratch
    """
    v = pl.program_id(1)

    # Once per row tile (first reduction step): teacher softmax + raw column
    # sums, zero the CE accumulator.  q stays VMEM-resident across the v loop.
    @pl.when(v == 0)
    def _init():
        t_raw = teacher_ref[...].astype(jnp.float32)               # (2, TB, D)
        center = center_ref[...].astype(jnp.float32)               # (1, D)
        t = (t_raw - center) * inv_tt_ref[0]
        t = t - jnp.max(t, axis=-1, keepdims=True)
        t_exp = jnp.exp(t)
        q_ref[...] = t_exp / jnp.sum(t_exp, axis=-1, keepdims=True)  # exact div
        ce_ref[...] = jnp.zeros_like(ce_ref)
        tsum_ref[...] = jnp.sum(jnp.sum(t_raw, axis=0), axis=0, keepdims=True)

    # Student log_softmax for crop v on this row tile (f32 math).
    s = student_ref[0].astype(jnp.float32) * INV_STUDENT_TEMP       # (TB, D)
    s = s - jnp.max(s, axis=-1, keepdims=True)
    # TODO(synk): on v6e/v7x a bf16 EUP exp here would ~2x transcendental
    # throughput if the EUP slot binds after tiling (not valid on v5e).
    lse = jnp.log(jnp.sum(jnp.exp(s), axis=-1, keepdims=True))
    log_p = s - lse                                                 # (TB, D)

    # Pair weights implementing "skip v == iq":  w = [v!=0]*q0 + [v!=1]*q1.
    a0 = (v != 0).astype(jnp.float32)
    a1 = (v != 1).astype(jnp.float32)
    w = a0 * q_ref[0] + a1 * q_ref[1]                               # (TB, D)
    ce_ref[...] += jnp.sum(-w * log_p, axis=-1, keepdims=True)      # (TB, 1)


# ------------------------------ wrapper ---------------------------------------
def dino_loss(student_output, teacher_output, center, epoch):
    """Returns (total_loss, new_center) — loss forward + center EMA update."""
    n_rows, D = student_output.shape
    assert n_rows % NCROPS == 0
    B = n_rows // NCROPS
    assert teacher_output.shape == (2 * B, D)
    assert D % 128 == 0, "out_dim must be lane-dense (multiple of 128)"
    assert NCROPS >= 2

    teacher_temp = float(TEACHER_TEMP_SCHEDULE[int(epoch)])
    inv_tt = jnp.array([1.0 / teacher_temp], dtype=jnp.float32)

    tb = _pick_row_tile(B)
    assert B % tb == 0
    num_row_tiles = B // tb

    student3 = student_output.reshape(NCROPS, B, D)   # crop-major, free reshape
    teacher3 = teacher_output.reshape(2, B, D)

    ce_rows, teacher_colsum = pl.pallas_call(
        dino_loss_kernel,
        grid=(num_row_tiles, NCROPS),                 # reduction (crop) axis last
        in_specs=[
            pl.BlockSpec(memory_space=pltpu.MemorySpace.SMEM),        # 1/teacher_temp
            pl.BlockSpec((2, tb, D), lambda r, v: (0, r, 0)),         # teacher tile
            pl.BlockSpec((1, tb, D), lambda r, v: (v, r, 0)),         # student crop tile
            pl.BlockSpec((1, D), lambda r, v: (0, 0)),                # center
        ],
        out_specs=(
            pl.BlockSpec((tb, 1), lambda r, v: (r, 0)),               # per-row CE acc
            pl.BlockSpec((1, D), lambda r, v: (r, 0)),                # teacher col sums
        ),
        out_shape=(
            jax.ShapeDtypeStruct((B, 1), jnp.float32),
            jax.ShapeDtypeStruct((num_row_tiles, D), jnp.float32),
        ),
        scratch_shapes=[pltpu.VMEM((2, tb, D), jnp.float32)],         # teacher q
        compiler_params=pltpu.CompilerParams(
            dimension_semantics=("parallel", "arbitrary"),
            # Plenty for the toy shapes; for production D (up to 64K) re-derive
            # the row tile + this limit against 64 MiB (v7x) / 128 MiB (v5e/v6e).
            vmem_limit_bytes=32 * 1024 * 1024,
        ),
    )(inv_tt, teacher3, student3, center)

    loss = jnp.sum(ce_rows) * (1.0 / (N_LOSS_TERMS * B))

    # Center EMA update.  The tiny final combine over row-tile partials is done
    # in XLA: an in-kernel shared accumulator would race across the "parallel"
    # row axis on v7x.  (input_output_aliases not applicable with this split.)
    # TODO(synk): dist.all_reduce of batch_center across devices omitted
    # (single-device kernel).
    batch_center = jnp.sum(teacher_colsum, axis=0, keepdims=True) * (1.0 / (2 * B))
    new_center = center * CENTER_MOMENTUM + batch_center * (1.0 - CENTER_MOMENTUM)
    return loss, new_center


# ------------------------------ reference -------------------------------------
def dino_loss_ref(student_output, teacher_output, center, epoch):
    teacher_temp = float(TEACHER_TEMP_SCHEDULE[int(epoch)])
    s = student_output.astype(jnp.float32) / STUDENT_TEMP
    t = teacher_output.astype(jnp.float32)
    q = jax.nn.softmax((t - center) / teacher_temp, axis=-1)
    log_p = jax.nn.log_softmax(s, axis=-1)
    B = student_output.shape[0] // NCROPS
    total = 0.0
    n = 0
    for iq in range(2):
        q_iq = q[iq * B:(iq + 1) * B]
        for v in range(NCROPS):
            if v == iq:
                continue
            lp_v = log_p[v * B:(v + 1) * B]
            total += jnp.mean(jnp.sum(-q_iq * lp_v, axis=-1))
            n += 1
    total = total / n
    batch_center = jnp.sum(t, axis=0, keepdims=True) / t.shape[0]
    new_center = center * CENTER_MOMENTUM + batch_center * (1.0 - CENTER_MOMENTUM)
    return total, new_center


# -------------------------------- main -----------------------------------------
if __name__ == "__main__":
    key = jax.random.PRNGKey(0)
    k1, k2 = jax.random.split(key)

    # bf16 HBM storage for the big streams (kernel upcasts to f32 internally);
    # the reference consumes the same bf16 values so the comparison stays tight.
    student_output = jax.random.normal(
        k1, (NCROPS * BATCH, OUT_DIM), dtype=jnp.float32).astype(jnp.bfloat16)
    teacher_output = jax.random.normal(
        k2, (2 * BATCH, OUT_DIM), dtype=jnp.float32).astype(jnp.bfloat16)
    center = jnp.zeros((1, OUT_DIM), dtype=jnp.float32)   # buffer init: zeros
    epoch = 3

    loss, new_center = dino_loss(student_output, teacher_output, center, epoch)
    jax.block_until_ready(loss)
    jax.block_until_ready(new_center)

    loss_ref_v, new_center_ref_v = dino_loss_ref(student_output, teacher_output,
                                                 center, epoch)
    assert np.allclose(np.asarray(loss), np.asarray(loss_ref_v),
                       rtol=3e-4, atol=1e-3), (float(loss), float(loss_ref_v))
    assert np.allclose(np.asarray(new_center), np.asarray(new_center_ref_v),
                       rtol=1e-4, atol=1e-5)

    print("KERNEL_OK")
</pallas_src>

<mosaic_0001>
module attributes {stable_mosaic.version = 11 : i64} {
  func.func @dino_loss_kernel(%arg0: i32, %arg1: i32, %arg2: memref<1xf32, #tpu.memory_space<smem>>, %arg3: memref<2x8x128xbf16, #tpu.memory_space<vmem>>, %arg4: memref<1x8x128xbf16, #tpu.memory_space<vmem>>, %arg5: memref<1x128xf32, #tpu.memory_space<vmem>>, %arg6: memref<8x1xf32, #tpu.memory_space<vmem>>, %arg7: memref<1x128xf32, #tpu.memory_space<vmem>>, %arg8: memref<2x8x128xf32, #tpu.memory_space<vmem>>) attributes {dimension_semantics = [#tpu.dimension_semantics<parallel>, #tpu.dimension_semantics<arbitrary>], iteration_bounds = array<i64: 1, 6>, scalar_prefetch = 0 : i64, scratch_operands = 1 : i64, tpu.core_type = #tpu.core_type<tc>, window_params = [{transform_indices = @transform_0, window_bounds = array<i64: 1>}, {transform_indices = @transform_1, window_bounds = array<i64: 2, 8, 128>}, {transform_indices = @transform_2, window_bounds = array<i64: 1, 8, 128>}, {pipeline_mode = #tpu.pipeline_mode<synchronous>, transform_indices = @transform_3, window_bounds = array<i64: 1, 128>}, {transform_indices = @transform_4, window_bounds = array<i64: 8, 1>}, {transform_indices = @transform_5, window_bounds = array<i64: 1, 128>}]} {
    %c0_i32 = arith.constant 0 : i32
    %0 = arith.cmpi eq, %arg1, %c0_i32 : i32
    %1 = arith.extui %0 : i1 to i32
    %c0_i32_0 = arith.constant 0 : i32
    %2 = arith.cmpi ne, %1, %c0_i32_0 : i32
    scf.if %2 {
      %c0_17 = arith.constant 0 : index
      %c0_18 = arith.constant 0 : index
      %c0_19 = arith.constant 0 : index
      %41 = vector.load %arg3[%c0_17, %c0_18, %c0_19] : memref<2x8x128xbf16, #tpu.memory_space<vmem>>, vector<2x8x128xbf16>
      %42 = arith.extf %41 : vector<2x8x128xbf16> to vector<2x8x128xf32>
      %c0_20 = arith.constant 0 : index
      %c0_21 = arith.constant 0 : index
      %43 = vector.load %arg5[%c0_20, %c0_21] : memref<1x128xf32, #tpu.memory_space<vmem>>, vector<1x128xf32>
      %44 = vector.shape_cast %43 : vector<1x128xf32> to vector<1x1x128xf32>
      %45 = vector.broadcast %44 : vector<1x1x128xf32> to vector<2x8x128xf32>
      %46 = arith.subf %42, %45 : vector<2x8x128xf32>
      %c0_22 = arith.constant 0 : index
      %47 = memref.load %arg2[%c0_22] : memref<1xf32, #tpu.memory_space<smem>>
      %48 = vector.broadcast %47 : f32 to vector<2x8x128xf32>
      %49 = arith.mulf %46, %48 : vector<2x8x128xf32>
      %cst_23 = arith.constant dense<0xFF800000> : vector<2x8xf32>
      %50 = vector.multi_reduction <maximumf>, %49, %cst_23 [2] : vector<2x8x128xf32> to vector<2x8xf32>
      %51 = vector.shape_cast %50 : vector<2x8xf32> to vector<2x8x1xf32>
      %52 = vector.broadcast %51 : vector<2x8x1xf32> to vector<2x8x128xf32>
      %53 = arith.subf %49, %52 : vector<2x8x128xf32>
      %54 = math.exp %53 : vector<2x8x128xf32>
      %cst_24 = arith.constant dense<0.000000e+00> : vector<2x8xf32>
      %55 = vector.multi_reduction <add>, %54, %cst_24 [2] : vector<2x8x128xf32> to vector<2x8xf32>
      %56 = vector.shape_cast %55 : vector<2x8xf32> to vector<2x8x1xf32>
      %57 = vector.broadcast %56 : vector<2x8x1xf32> to vector<2x8x128xf32>
      %58 = arith.divf %54, %57 : vector<2x8x128xf32>
      %c0_25 = arith.constant 0 : index
      %c0_26 = arith.constant 0 : index
      %c0_27 = arith.constant 0 : index
      %59 = vector.load %arg8[%c0_25, %c0_26, %c0_27] : memref<2x8x128xf32, #tpu.memory_space<vmem>>, vector<2x8x128xf32>
      tpu.vector_store %arg8[%c0_25, %c0_26, %c0_27], %58 {strides = array<i32>} : memref<2x8x128xf32, #tpu.memory_space<vmem>>, vector<2x8x128xf32>,
      %cst_28 = arith.constant 0.000000e+00 : f32
      %60 = vector.broadcast %cst_28 : f32 to vector<8x1xf32>
      %c0_29 = arith.constant 0 : index
      %c0_30 = arith.constant 0 : index
      %61 = vector.load %arg6[%c0_29, %c0_30] : memref<8x1xf32, #tpu.memory_space<vmem>>, vector<8x1xf32>
      tpu.vector_store %arg6[%c0_29, %c0_30], %60 {strides = array<i32>} : memref<8x1xf32, #tpu.memory_space<vmem>>, vector<8x1xf32>,
      %cst_31 = arith.constant dense<0.000000e+00> : vector<8x128xf32>
      %62 = vector.multi_reduction <add>, %42, %cst_31 [0] : vector<2x8x128xf32> to vector<8x128xf32>
      %cst_32 = arith.constant dense<0.000000e+00> : vector<128xf32>
      %63 = vector.multi_reduction <add>, %62, %cst_32 [0] : vector<8x128xf32> to vector<128xf32>
      %64 = vector.shape_cast %63 : vector<128xf32> to vector<1x128xf32>
      %c0_33 = arith.constant 0 : index
      %c0_34 = arith.constant 0 : index
      %65 = vector.load %arg7[%c0_33, %c0_34] : memref<1x128xf32, #tpu.memory_space<vmem>>, vector<1x128xf32>
      tpu.vector_store %arg7[%c0_33, %c0_34], %64 {strides = array<i32>} : memref<1x128xf32, #tpu.memory_space<vmem>>, vector<1x128xf32>,
    } else {
    }
    %c0 = arith.constant 0 : index
    %c0_1 = arith.constant 0 : index
    %c0_2 = arith.constant 0 : index
    %3 = vector.load %arg4[%c0, %c0_1, %c0_2] : memref<1x8x128xbf16, #tpu.memory_space<vmem>>, vector<1x8x128xbf16>
    %4 = vector.shape_cast %3 : vector<1x8x128xbf16> to vector<8x128xbf16>
    %5 = arith.extf %4 : vector<8x128xbf16> to vector<8x128xf32>
    %cst = arith.constant 1.000000e+01 : f32
    %6 = vector.broadcast %cst : f32 to vector<8x128xf32>
    %7 = arith.mulf %5, %6 : vector<8x128xf32>
    %cst_3 = arith.constant dense<0xFF800000> : vector<8xf32>
    %8 = vector.multi_reduction <maximumf>, %7, %cst_3 [1] : vector<8x128xf32> to vector<8xf32>
    %9 = vector.shape_cast %8 : vector<8xf32> to vector<8x1xf32>
    %10 = vector.broadcast %9 : vector<8x1xf32> to vector<8x128xf32>
    %11 = arith.subf %7, %10 : vector<8x128xf32>
    %12 = math.exp %11 : vector<8x128xf32>
    %cst_4 = arith.constant dense<0.000000e+00> : vector<8xf32>
    %13 = vector.multi_reduction <add>, %12, %cst_4 [1] : vector<8x128xf32> to vector<8xf32>
    %14 = vector.shape_cast %13 : vector<8xf32> to vector<8x1xf32>
    %15 = math.log %14 : vector<8x1xf32>
    %16 = vector.broadcast %15 : vector<8x1xf32> to vector<8x128xf32>
    %17 = arith.subf %11, %16 : vector<8x128xf32>
    %c0_i32_5 = arith.constant 0 : i32
    %18 = arith.cmpi ne, %arg1, %c0_i32_5 : i32
    %19 = arith.extui %18 : i1 to i32
    %20 = arith.sitofp %19 : i32 to f32
    %c1_i32 = arith.constant 1 : i32
    %21 = arith.cmpi ne, %arg1, %c1_i32 : i32
    %22 = arith.extui %21 : i1 to i32
    %23 = arith.sitofp %22 : i32 to f32
    %c0_6 = arith.constant 0 : index
    %c0_7 = arith.constant 0 : index
    %c0_8 = arith.constant 0 : index
    %24 = vector.load %arg8[%c0_6, %c0_7, %c0_8] : memref<2x8x128xf32, #tpu.memory_space<vmem>>, vector<1x8x128xf32>
    %25 = vector.shape_cast %24 : vector<1x8x128xf32> to vector<8x128xf32>
    %26 = vector.broadcast %20 : f32 to vector<8x128xf32>
    %27 = arith.mulf %26, %25 : vector<8x128xf32>
    %c1 = arith.constant 1 : index
    %c0_9 = arith.constant 0 : index
    %c0_10 = arith.constant 0 : index
    %28 = vector.load %arg8[%c1, %c0_9, %c0_10] : memref<2x8x128xf32, #tpu.memory_space<vmem>>, vector<1x8x128xf32>
    %29 = vector.shape_cast %28 : vector<1x8x128xf32> to vector<8x128xf32>
    %30 = vector.broadcast %23 : f32 to vector<8x128xf32>
    %31 = arith.mulf %30, %29 : vector<8x128xf32>
    %32 = arith.addf %27, %31 : vector<8x128xf32>
    %c0_11 = arith.constant 0 : index
    %c0_12 = arith.constant 0 : index
    %33 = vector.load %arg6[%c0_11, %c0_12] : memref<8x1xf32, #tpu.memory_space<vmem>>, vector<8x1xf32>
    %cst_13 = arith.constant 0.000000e+00 : f32
    %34 = vector.broadcast %cst_13 : f32 to vector<8x128xf32>
    %35 = arith.subf %34, %32 : vector<8x128xf32>
    %36 = arith.mulf %35, %17 : vector<8x128xf32>
    %cst_14 = arith.constant dense<0.000000e+00> : vector<8xf32>
    %37 = vector.multi_reduction <add>, %36, %cst_14 [1] : vector<8x128xf32> to vector<8xf32>
    %38 = vector.shape_cast %37 : vector<8xf32> to vector<8x1xf32>
    %39 = arith.addf %33, %38 : vector<8x1xf32>
    %c0_15 = arith.constant 0 : index
    %c0_16 = arith.constant 0 : index
    %40 = vector.load %arg6[%c0_15, %c0_16] : memref<8x1xf32, #tpu.memory_space<vmem>>, vector<8x1xf32>
    tpu.vector_store %arg6[%c0_15, %c0_16], %39 {strides = array<i32>} : memref<8x1xf32, #tpu.memory_space<vmem>>, vector<8x1xf32>,
    return
  }
  func.func @transform_0(%arg0: i32, %arg1: i32) -> i32 {
    %c0_i32 = arith.constant 0 : i32
    %c0_i32_0 = arith.constant 0 : i32
    return %c0_i32 : i32
  }
  func.func @transform_1(%arg0: i32, %arg1: i32) -> (i32, i32, i32) {
    %c0_i32 = arith.constant 0 : i32
    %c0_i32_0 = arith.constant 0 : i32
    %c0_i32_1 = arith.constant 0 : i32
    return %c0_i32, %arg0, %c0_i32_0 : i32, i32, i32
  }
  func.func @transform_2(%arg0: i32, %arg1: i32) -> (i32, i32, i32) {
    %c0_i32 = arith.constant 0 : i32
    %c0_i32_0 = arith.constant 0 : i32
    return %arg1, %arg0, %c0_i32 : i32, i32, i32
  }
  func.func @transform_3(%arg0: i32, %arg1: i32) -> (i32, i32) {
    %c0_i32 = arith.constant 0 : i32
    %c0_i32_0 = arith.constant 0 : i32
    %c0_i32_1 = arith.constant 0 : i32
    return %c0_i32, %c0_i32_0 : i32, i32
  }
  func.func @transform_4(%arg0: i32, %arg1: i32) -> (i32, i32) {
    %c0_i32 = arith.constant 0 : i32
    %c0_i32_0 = arith.constant 0 : i32
    return %arg0, %c0_i32 : i32, i32
  }
  func.func @transform_5(%arg0: i32, %arg1: i32) -> (i32, i32) {
    %c0_i32 = arith.constant 0 : i32
    %c0_i32_0 = arith.constant 0 : i32
    return %arg0, %c0_i32 : i32, i32
  }
}

</mosaic_0001>

<bundles_post_ra>
// kernel: tpu_custom_call.1
= control target key start
LH: loop header
LB: loop body
LE: loop exit
PB: predicated region body
PF: predicated region fallthrough
CT: control target
= control target key end

     0   :  { %s924_s0 = inlined_call_operand.<no memory space> [shape: f32[1], index: 0, kind: input, shape index: {}]   ;;  %s925_s1 = inlined_call_operand.hbm [shape: bf16[2,8,128], index: 1, kind: input, shape index: {}]   ;;  %s926_s2 = inlined_call_operand.hbm [shape: bf16[6,8,128], index: 2, kind: input, shape index: {}]   ;;  %s927_s3 = inlined_call_operand.vmem [shape: f32[1,128], index: 3, kind: input, shape index: {}]   ;;  %s928_s4 = inlined_call_operand.vmem [shape: f32[8,1], index: 4, kind: output, shape index: {0}]   ;;  %s929_s5 = inlined_call_operand.hbm [shape: f32[1,128], index: 5, kind: output, shape index: {1}]  }
   0x1   :  { %11 = sst [smem:[#allocation3]] %s924_s0 }
   0x2   :  { %12 = vsyncpa [#allocation5], 0 }
   0x3   :  { %13 = vsyncpa [#allocation8], 0 }
   0x4   :  { %15 = vsyncpa [#allocation8 + $0x1], 0 }
   0x5   :  { %16 = vsyncpa [#allocation6], 0  ;;  %s766_s20 = smov 0   ;;  %s768_s21 = smov 0  }
   0x6   :  { %s770_s22 = smov 0   ;;  %s772_s23 = smov 0  }
   0x7   :  { %s774_s24 = smov 0   ;;  %s776_s25 = smov 0  }
   0x8 LB: > { %s481_s0 = sadd.s32 4294967295, %s725_s25   ;;  %p103_p0 = scmp.ne.s32.totalorder %s709_s21, %s705_s20  ;;  %s725_s25 = sphi %s776_s25, %s22_s25   ;;  %s721_s24 = sphi %s774_s24, %s940_s24   ;;  %s717_s23 = sphi %s772_s23, %s939_s23   ;;  %s713_s22 = sphi %s770_s22, %s938_s22   ;;  %s709_s21 = sphi %s768_s21, %s937_s21   ;;  %s705_s20 = sphi %s766_s20, %s936_s20  }
   0x9   : > { %p798_p1 = scmp.eq.s32.totalorder %s481_s0, 0  ;;  %p482_p2 = scmp.ge.s32.totalorder %s725_s25, 1 }
   0xa   : > { %p187_p3 = scmp.lt.s32.totalorder %s725_s25, 7  ;;  %s727_s29 = smov [#allocation4]  }
   0xb   : > { %p806_p4 = por %p798_p1, %p103_p0  ;;  %s204_s30 = sshll.u32 %s727_s29, 4  ;;  %s205_s30 = int_to_ptr.vmem [resolvable:$true] %s204_s30 }
   0xc   : > { %p810_p5 = pnand %p482_p2, %p187_p3  ;;  %s31_s7 = sadd.s32 1, %s721_s24 }
   0xd   : > { %s600_s8 = scalar_lea.vmem %s205_s30, 128  ;;  %p608_p12 = scmp.lt.s32.totalorder %s205_s30, %s205_s30 }
   0xe   : > { %p511_p6 = pneg %p810_p5  ;;  %p601_p9 = scmp.ne.s32.totalorder %s205_s30, %s600_s8 }
   0xf   : > { %p609_p13 = scmp.lt.s32.totalorder %s600_s8, %s600_s8 }
  0x10   : > { %p818_p7 = pnand %p511_p6, %p798_p1 }
  0x11   : > { %p610_p0 = por %p609_p13, %p608_p12 }
  0x12   : > { %p591_p8 = pneg %p818_p7 }
  0x14   : > { %p603_p10 = pnand %p601_p9, %p591_p8 }
  0x16   : > { %p604_p11 = pneg %p603_p10 }
  0x18   : > { %p611_p2 = pnand %p610_p0, %p604_p11 }
  0x1a   : > { %614 = shalt.err (!%p611_p2)
}
  0x1b   : > { %s728_s9 = smov 64   ;;  %s729_s10 = smov 4  }
  0x1c   : > { %514 = dma.hbm_to_vmem [thread:$0]  (!%p818_p7), %s925_s1, 128, %s205_s30, [#allocation5], %s728_s9, %s728_s9, %s729_s10  }
  0x1d   : > { %p32_p3 = scmp.ge.s32.totalorder %s31_s7, 6  ;;  %s90_s13 = sadd.s32 1, %s713_s22 }
  0x1e   : > { %p97_p6 = scmp.ne.s32.totalorder %s713_s22, %s709_s21  ;;  %p98_p8 = scmp.eq.s32.totalorder %s725_s25, 0 }
  0x1f   : > { %s942_s7 = smov (%p32_p3, %s31_s7), 0  ;;  %p520_p10 = scmp.lt.s32.totalorder %s725_s25, 6 }
  0x20   : > { %p99_p9 = por %p98_p8, %p97_p6  ;;  %s85_s14 = ssub.s32 %s721_s24, %s942_s7 }
  0x21   : > { %s221_s15 = sand.u32 1, %s713_s22   ;;  %p88_p11 = scmp.eq.s32.totalorder %s85_s14, 0 }
  0x22   : > { %s485_s16 = sshll.u32 %s221_s15, 2  ;;  %s486_s17 = sshll.u32 %s721_s24, 6 }
  0x23   : > { %s842_s18 = scalar_select %p88_p11, %s713_s22, %s90_s13  }
  0x24   : > { %s231_s29 = scalar_lea.hbm %s926_s2, %s486_s17  ;;  %s225_s30 = scalar_lea.vmem [#allocation7], %s485_s16 }
  0x25   : > { %s233_s6 = sshll.u32 %s225_s30, 4  ;;  %p847_p7 = pnand %p520_p10, %p99_p9  ;;  %s234_s6 = int_to_ptr.vmem [resolvable:$true] %s233_s6 }
  0x26   : > { %s222_s9 = scalar_lea.sflag [#allocation8], %s221_s15  ;;  %s628_s10 = scalar_lea.vmem %s234_s6, 64 }
  0x27   : > { %p617_p12 = pneg %p847_p7  ;;  %p629_p13 = scmp.ne.s32.totalorder %s234_s6, %s628_s10 }
  0x28   : > { %s730_s11 = smov [#allocation7]  }
  0x29   : > { %p631_p0 = pnand %p629_p13, %p617_p12  ;;  %s633_s12 = sshll.u32 %s730_s11, 4  ;;  %s634_s12 = int_to_ptr.vmem [resolvable:$false] %s633_s12 }
  0x2a   : > { %s635_s13 = scalar_lea.vmem %s634_s12, 128  ;;  %p636_p3 = scmp.lt.s32.totalorder %s234_s6, %s634_s12 }
  0x2b   : > { %p632_p2 = pneg %p631_p0  ;;  %p637_p6 = scmp.lt.s32.totalorder %s635_s13, %s628_s10 }
  0x2d   : > { %p638_p8 = por %p637_p6, %p636_p3 }
  0x2f   : > { %p639_p9 = pnand %p638_p8, %p632_p2 }
  0x31   : > { %642 = shalt.err (!%p639_p9)
}
  0x32   : > { %518 = dma.hbm_to_vmem [thread:$0]  (!%p847_p7), %s231_s29, 64, %s234_s6, %s222_s9  }
  0x33   : > { %242 = sbr.rel (%p810_p5) target bundleno = 852 (0x354), region = 36 }
  0x38   : > { %692 = dma.done.wait (%p798_p1), [#allocation5], 128  }
  0x39   : > { %694 = vsyncadd (%p798_p1), [#allocation5], 4294967168  ;;  %s248_s14 = sand.u32 1, %s709_s21  }
  0x3a   : > { %s862_s15 = sshll.u32 %s248_s14, 2  ;;  %s249_s16 = scalar_lea.sflag [#allocation8], %s248_s14 }
  0x3b   : > { %s252_s17 = scalar_lea.vmem [#allocation7], %s862_s15 }
  0x3c   : > { %696 = dma.done.wait (%p806_p4), %s249_s16, 64  }
  0x3d   : > { %698 = vsyncadd (%p806_p4), %s249_s16, 4294967232  ;;  %p490_p5 = scmp.ne.s32.totalorder %s717_s23, 0 }
  0x3e   : > { %s299_s19 = sld [smem:[#allocation3]] (!%p490_p5) }
  0x3f   : > { %285 = sbr.rel (%p490_p5) target bundleno = 390 (0x186), region = 48 }
  0x44   : > { %v498_v0 = vld [vmem:[#allocation4] sm:$0xff]   ;;  %v491_v1 = vld [vmem:[%s927_s3] ss:$0 sm:$0xff]  ;;  %v300_v8 = vstv %s299_s19  ;;  %vm323_vm0 = vcmask 7168   ;;  %v731_v24 = vmov 0.0  }
  0x45   : > { %v499_v2 = vunpack.c.l.bf16 %v498_v0  ;;  %v500_v3 = vunpack.c.h.bf16 %v498_v0  ;;  %324 = vst.msk [vmem:[%s928_s4] sm:$0xff] %vm323_vm0, %v731_v24 }
  0x47   : > { %v297_v4 = vsub.f32 %v499_v2, %v491_v1  ;;  %v325_v5 = vadd.f32 %v500_v3, %v499_v2  ;;  %v298_v6 = vsub.f32 %v500_v3, %v491_v1 }
  0x49   : > { %v326_v7 = vrot.slane %v325_v5, 4  ;;  %v301_v9 = vmul.f32 %v300_v8, %v297_v4  ;;  %v302_v11 = vmul.f32 %v300_v8, %v298_v6 }
  0x4b   : > { %v327_v10 = vadd.f32 %v326_v7, %v325_v5  ;;  %303 = vmax.xlane.f32.xlu0 %v301_v9 }
  0x4d   : > { %v328_v12 = vrot.slane %v327_v10, 2 }
  0x4f   : > { %v329_v13 = vadd.f32 %v328_v12, %v327_v10  ;;  %305 = vmax.xlane.f32.xlu0 %v302_v11 }
  0x51   : > { %v330_v14 = vrot.slane %v329_v13, 1 }
  0x53   : > { %v331_v15 = vadd.f32 %v330_v14, %v329_v13 }
  0x55   : > { %332 = vst [vmem:[#allocation9] sm:$0x1] %v331_v15 }
  0xd4   : > { %v304_v16 = vpop.xlane.xlu0 %303 }
  0xd5   : > { %v307_v17 = vsub.f32 %v301_v9, %v304_v16 }
  0xd7   : > { %v309_v18 = vmul.f32 1.442695, %v307_v17 }
  0xd8   : > { %v306_v19 = vpop.xlane.xlu0 %305 }
  0xd9   : > { %577 = vpow2.f32 %v309_v18  ;;  %v308_v20 = vsub.f32 %v302_v11, %v306_v19 }
  0xdb   : > { %v311_v21 = vmul.f32 1.442695, %v308_v20 }
  0xdd   : > { %579 = vpow2.f32 %v311_v21 }
  0xe6   : > { %v578_v22 = vpop.eup %577 }
  0xe7   : > { %313 = vadd.xlane.f32.xlu1 %v578_v22 }
  0xea   : > { %v580_v23 = vpop.eup %579 }
  0xeb   : > { %315 = vadd.xlane.f32.xlu1 %v580_v23 }
 0x170   : > { %v314_v25 = vpop.xlane.xlu1 %313 }
 0x171   : > { %581 = vrcp.f32 %v314_v25 }
 0x174   : > { %v316_v26 = vpop.xlane.xlu1 %315 }
 0x175   : > { %583 = vrcp.f32 %v316_v26 }
 0x17e   : > { %v582_v27 = vpop.eup %581 }
 0x17f   : > { %v318_v28 = vmul.f32 %v582_v27, %v578_v22 }
 0x181   : > { %321 = vst [vmem:[#allocation2] sm:$0xff] %v318_v28 }
 0x182   : > { %v584_v29 = vpop.eup %583 }
 0x183   : > { %v320_v30 = vmul.f32 %v584_v29, %v580_v23 }
 0x185   : > { %322 = vst [vmem:[#allocation2 + $0x8] sm:$0xff] %v320_v30 }
 0x186 PF: > { %v333_v31 = vld [vmem:[%s252_s17] sm:$0xf]  ;;  %p349_p1 = scmp.ne.s32.totalorder %s717_s23, 1  ;;  %p885_p4 = scmp.eq.s32.totalorder %s481_s0, 5 }
 0x187   : > { %v334_v32 = vunpack.c.l.bf16 %v333_v31  ;;  %s347_s29 = scalar_select %p490_p5, 1, 0 }
 0x188   : > { %s350_s30 = scalar_select %p349_p1, 1, 0  ;;  %v352_v39 = vld [vmem:[#allocation2] sm:$0xff] }
 0x189   : > { %v335_v33 = vmul.f32 10.0, %v334_v32  ;;  %s348_s6 = scvt.s32.f32 %s347_s29  ;;  %s732_s9 = smov [#allocation9]  }
 0x18a   : > { %s351_s8 = scvt.s32.f32 %s350_s30  ;;  %s384_s10 = sshll.u32 %s732_s9, 4  ;;  %s385_s10 = int_to_ptr.vmem [resolvable:$true] %s384_s10 }
 0x18b   : > { %336 = vmax.xlane.f32.xlu0 %v335_v33  ;;  %v353_v40 = vstv %s348_s6  ;;  %s643_s11 = scalar_lea.vmem %s385_s10, 16  ;;  %s649_s12 = scalar_lea.vmem %s385_s10, 32 }
 0x18c   : > { %v356_v41 = vld [vmem:[#allocation2 + $0x8] sm:$0xff]  ;;  %v357_v42 = vstv %s351_s8  ;;  %v354_v43 = vmul.f32 %v353_v40, %v352_v39  ;;  %p644_p10 = scmp.ne.s32.totalorder %s385_s10, %s643_s11  ;;  %p650_p12 = scmp.lt.s32.totalorder %s385_s10, %s385_s10 }
 0x18d   : > { %v358_v44 = vmul.f32 %v357_v42, %v356_v41  ;;  %p651_p13 = scmp.lt.s32.totalorder %s649_s12, %s643_s11 }
 0x18e   : > { %p645_p11 = pnand %p644_p10, %p885_p4 }
 0x18f   : > { %v359_v45 = vadd.f32 %v358_v44, %v354_v43  ;;  %p652_p0 = por %p651_p13, %p650_p12 }
 0x190   : > { %p646_p7 = pneg %p645_p11 }
 0x191   : > { %v361_v48 = vsub.f32 0.0, %v359_v45 }
 0x192   : > { %p653_p2 = pnand %p652_p0, %p646_p7 }
 0x214   : > { %v337_v34 = vpop.xlane.xlu0 %336 }
 0x215   : > { %v338_v35 = vsub.f32 %v335_v33, %v337_v34 }
 0x217   : > { %v339_v36 = vmul.f32 1.442695, %v338_v35 }
 0x219   : > { %585 = vpow2.f32 %v339_v36 }
 0x226   : > { %v586_v37 = vpop.eup %585 }
 0x227   : > { %341 = vadd.xlane.f32.xlu0 %v586_v37 }
 0x2b0   : > { %v342_v38 = vpop.xlane.xlu0 %341 }
 0x2b1   : > { %587 = vlog2.f32 %v342_v38 }
 0x2be   : > { %v588_v46 = vpop.eup %587 }
 0x2bf   : > { %v344_v47 = vmul.f32 0.6931472, %v588_v46 }
 0x2c1   : > { %v345_v49 = vsub.f32 %v338_v35, %v344_v47 }
 0x2c3   : > { %v362_v50 = vmul.f32 %v361_v48, %v345_v49 }
 0x2c5   : > { %363 = vadd.xlane.f32.xlu1 %v362_v50 }
 0x2c6   : > { %656 = shalt.err (!%p653_p2)
}
 0x2c7   : > { %508 = dma.vmem_to_hbm [thread:$0]  (%p885_p4), %s385_s10, 16, %s929_s5, [#allocation6]   ;;  %v360_v51 = vld [vmem:[%s928_s4] sm:$0xff]  ;;  %vm366_vm1 = vcmask 7168  }
 0x34e   : > { %v364_v52 = vpop.xlane.xlu1 %363 }
 0x34f   : > { %v365_v53 = vadd.f32 %v364_v52, %v360_v51 }
 0x351   : > { %367 = vst.msk [vmem:[%s928_s4] sm:$0xff] %vm366_vm1, %v365_v53 }
 0x352   : > { %700 = dma.done.wait (%p885_p4), [#allocation6], 16  }
 0x353   : > { %702 = vsyncadd (%p885_p4), [#allocation6], 4294967280 }
 0x354 PF: > { %s22_s25 = sadd.s32 1, %s725_s25   ;;  %s936_s20 = smov %s709_s21 }
 0x355   : > { %p19_p3 = scmp.ge.s32.totalorder %s22_s25, 8   ;;  %s937_s21 = smov %s713_s22 }
 0x356   : > { %s938_s22 = smov %s842_s18  ;;  %s939_s23 = smov %s721_s24 }
 0x357   : > { %s940_s24 = smov %s942_s7  ;;  %21 = sbr.rel (!%p19_p3) target bundleno = 8 (0x8), region = 97 }
 0x35c   :  { %404 = vsyncpa [#allocation5], 1 }
 0x35d   :  { %406 = vsyncpa [#allocation5 + $0x1], 1 }
 0x35e   :  { %407 = vsyncpa [#allocation8], 1 }
 0x35f   :  { %409 = vsyncpa [#allocation8 + $0x1], 1 }
 0x360   :  { %410 = vsyncpa [#allocation6], 1 }
 0x361   :  { %412 = vsyncpa [#allocation6 + $0x1], 1 }

</bundles_post_ra>
